<compile_context>
chip_gen: v7x
topology: tpu7x:2x2x1
jax: 0.10.0
libtpu: 0.0.40
codegen_flags: <defaults>
</compile_context>

<pallas_src>
import math
import functools

import jax
import jax.numpy as jnp
from jax.experimental import pallas as pl
from jax.experimental.pallas import tpu as pltpu


_NEG_INF = -1e30  # large finite negative (avoids -inf - -inf = NaN corner)


def _round_up(x, m):
    return ((x + m - 1) // m) * m


def _default_vmem_limit():
    """Generation-aware VMEM budget: ~5/8 of per-core capacity, capped."""
    cap = 64 * 1024 * 1024
    try:
        info = pltpu.get_tpu_info()
        cap = int(getattr(info, "vmem_capacity_bytes", cap))
    except Exception:
        pass
    return max(32 * 1024 * 1024, min(cap * 5 // 8, 96 * 1024 * 1024))


# --------------------------------------------------------------------------
# Linear projection kernel:  y = x @ W + b   (tiled over batch and tokens)
# --------------------------------------------------------------------------
def _linear_kernel(x_ref, w_ref, b_ref, o_ref):
    # x_ref: (TN, E); w_ref: (E, D); b_ref: (1, D). f32 accumulation on MXU.
    y = jnp.dot(x_ref[...], w_ref[...], preferred_element_type=jnp.float32)
    o_ref[...] = (y + b_ref[...]).astype(o_ref.dtype)


def _project(x, w, b2, *, tile_n, vmem_limit):
    """x: (B, N, E) -> (B, N, D) with N a multiple of tile_n."""
    B, N, E = x.shape
    D = w.shape[1]
    TN = min(tile_n, N)
    assert N % TN == 0
    itemsize = jnp.dtype(x.dtype).itemsize
    w_itemsize = jnp.dtype(w.dtype).itemsize
    cost = pl.CostEstimate(
        flops=int(2 * B * N * E * D),
        transcendentals=0,
        bytes_accessed=int(B * N * (E + D) * itemsize
                           + (E * D + D) * w_itemsize),
    )
    return pl.pallas_call(
        _linear_kernel,
        out_shape=jax.ShapeDtypeStruct((B, N, D), x.dtype),
        grid_spec=pltpu.PrefetchScalarGridSpec(
            num_scalar_prefetch=0,
            grid=(B, N // TN),
            in_specs=[
                pl.BlockSpec((None, TN, E), lambda b, n: (b, n, 0)),
                pl.BlockSpec((E, D), lambda b, n: (0, 0)),
                pl.BlockSpec((1, D), lambda b, n: (0, 0)),
            ],
            out_specs=pl.BlockSpec((None, TN, D), lambda b, n: (b, n, 0)),
        ),
        compiler_params=pltpu.CompilerParams(
            dimension_semantics=("parallel", "parallel"),
            vmem_limit_bytes=vmem_limit,
        ),
        cost_estimate=cost,
    )(x, w, b2)


# --------------------------------------------------------------------------
# Flash-style multi-head attention core (+ fused output projection)
# --------------------------------------------------------------------------
def _flash_attn_kernel(qp_ref, kp_ref, vp_ref, wo_ref, bo_ref, o_ref,
                       m_ref, l_ref, acc_ref,
                       *, num_heads, head_dim, nk_real, tile_k, mask_last):
    # qp_ref: (TQ, D) projected & pre-scaled queries (batch/q-tile squeezed)
    # kp_ref/vp_ref: (TK, D) projected keys / values for the current key tile
    # scratch: m_ref/l_ref (TQ, H) f32, acc_ref (TQ, D) f32 — persist over kv.
    kv = pl.program_id(2)

    @pl.when(kv == 0)
    def _init():
        m_ref[...] = jnp.full_like(m_ref, _NEG_INF)
        l_ref[...] = jnp.zeros_like(l_ref)
        acc_ref[...] = jnp.zeros_like(acc_ref)

    q = qp_ref[...]                      # compute dtype (bf16 stays bf16)
    k = kp_ref[...]
    v = vp_ref[...]
    cdt = q.dtype
    tq = q.shape[0]

    if mask_last:
        # Mask out padded key columns (only needed when Nk % TK != 0).
        col = kv * tile_k + jax.lax.broadcasted_iota(jnp.int32, (tq, tile_k), 1)
        valid = col < nk_real

    for hd in range(num_heads):
        lo = hd * head_dim
        qh = q[:, lo:lo + head_dim]      # (TQ, Dh)
        kh = k[:, lo:lo + head_dim]      # (TK, Dh)
        vh = v[:, lo:lo + head_dim]      # (TK, Dh)

        # scores = qh @ kh^T (contract Dh, no explicit transpose) -> (TQ, TK)
        s = jax.lax.dot_general(qh, kh, (((1,), (1,)), ((), ())),
                                preferred_element_type=jnp.float32)
        if mask_last:
            s = jnp.where(valid, s, _NEG_INF)

        # online softmax update (f32)
        m_prev = m_ref[:, hd:hd + 1]
        l_prev = l_ref[:, hd:hd + 1]
        m_new = jnp.maximum(m_prev, jnp.max(s, axis=-1, keepdims=True))
        alpha = jnp.exp(m_prev - m_new)
        p = jnp.exp(s - m_new)
        l_ref[:, hd:hd + 1] = alpha * l_prev + jnp.sum(p, axis=-1, keepdims=True)
        m_ref[:, hd:hd + 1] = m_new

        # un-normalized per-head output accumulated straight into scratch
        acc_ref[:, lo:lo + head_dim] = (
            alpha * acc_ref[:, lo:lo + head_dim]
            + jnp.dot(p.astype(cdt), vh, preferred_element_type=jnp.float32))

    @pl.when(kv == pl.num_programs(2) - 1)
    def _finalize():
        # softmax denominator via EUP approximate reciprocal (VALU-free slot)
        inv_l = pl.reciprocal(l_ref[...], approx=True)          # (TQ, H)
        for hd in range(num_heads):
            lo = hd * head_dim
            acc_ref[:, lo:lo + head_dim] = (
                acc_ref[:, lo:lo + head_dim] * inv_l[:, hd:hd + 1])
        out = acc_ref[...].astype(cdt)                           # (TQ, D) lane-dense
        o = jnp.dot(out, wo_ref[...], preferred_element_type=jnp.float32)
        o_ref[...] = (o + bo_ref[...]).astype(o_ref.dtype)


def attention_forward(q, k, v, params, *, num_heads, tile_q=256, tile_k=512,
                      compute_dtype=None):
    """q: (B, Nq, E); k, v: (B, Nk, E). Returns (B, Nq, E) in q.dtype."""
    B, Nq, E = q.shape
    _, Nk, _ = k.shape
    wq, bq, wk, bk, wv, bv, wo, bo = params
    D = wq.shape[1]                      # internal_dim
    H = num_heads
    assert D % H == 0
    Dh = D // H

    out_dtype = q.dtype
    cdt = jnp.dtype(compute_dtype) if compute_dtype is not None else jnp.dtype(q.dtype)

    # Fold the 1/sqrt(Dh) score scale into the q projection; cast all weights
    # to the compute dtype (bf16 callers -> full-bf16 MXU path).
    scale = 1.0 / math.sqrt(Dh)
    wq_c = (wq.astype(jnp.float32) * scale).astype(cdt)
    bq_c = (bq.astype(jnp.float32) * scale).reshape(1, D).astype(cdt)
    wk_c = wk.astype(cdt)
    bk_c = bk.reshape(1, D).astype(cdt)
    wv_c = wv.astype(cdt)
    bv_c = bv.reshape(1, D).astype(cdt)
    wo_c = wo.astype(cdt)
    bo_c = bo.reshape(1, E).astype(cdt)

    vmem_limit = _default_vmem_limit()

    # Token tiling: TQ / TK multiples of 8 (sublanes); pad Nq / Nk as needed.
    TQ = min(tile_q, _round_up(Nq, 8))
    nq_pad = _round_up(Nq, TQ)
    TK = min(tile_k, _round_up(Nk, 8))
    nk_pad = _round_up(Nk, TK)

    q_in = q.astype(cdt)
    k_in = k.astype(cdt)
    v_in = v.astype(cdt)
    if nq_pad != Nq:
        q_in = jnp.pad(q_in, ((0, 0), (0, nq_pad - Nq), (0, 0)))
    if nk_pad != Nk:
        k_in = jnp.pad(k_in, ((0, 0), (0, nk_pad - Nk), (0, 0)))
        v_in = jnp.pad(v_in, ((0, 0), (0, nk_pad - Nk), (0, 0)))

    # ---- projections: computed exactly ONCE per token (hoisted) ----
    qp = _project(q_in, wq_c, bq_c, tile_n=TQ, vmem_limit=vmem_limit)
    kp = _project(k_in, wk_c, bk_c, tile_n=TK, vmem_limit=vmem_limit)
    vp = _project(v_in, wv_c, bv_c, tile_n=TK, vmem_limit=vmem_limit)

    num_q_tiles = nq_pad // TQ
    num_k_tiles = nk_pad // TK
    mask_last = (nk_pad != Nk)

    kernel = functools.partial(
        _flash_attn_kernel, num_heads=H, head_dim=Dh,
        nk_real=Nk, tile_k=TK, mask_last=mask_last)

    itemsize = jnp.dtype(cdt).itemsize
    cost = pl.CostEstimate(
        flops=int(2 * B * H * nq_pad * nk_pad * Dh * 2     # qk^T + p @ v
                  + 2 * B * nq_pad * D * E),               # output projection
        transcendentals=int(B * H * nq_pad * nk_pad),      # softmax exp
        bytes_accessed=int(B * nq_pad * D * itemsize               # qp
                           + B * num_q_tiles * nk_pad * 2 * D * itemsize  # kp, vp per q tile
                           + (D * E + E) * itemsize                # wo, bo
                           + B * nq_pad * E * itemsize),           # output
    )

    out = pl.pallas_call(
        kernel,
        out_shape=jax.ShapeDtypeStruct((B, nq_pad, E), out_dtype),
        grid_spec=pltpu.PrefetchScalarGridSpec(
            num_scalar_prefetch=0,
            grid=(B, num_q_tiles, num_k_tiles),
            in_specs=[
                pl.BlockSpec((None, TQ, D), lambda b, qi, kv: (b, qi, 0)),  # qp
                pl.BlockSpec((None, TK, D), lambda b, qi, kv: (b, kv, 0)),  # kp
                pl.BlockSpec((None, TK, D), lambda b, qi, kv: (b, kv, 0)),  # vp
                pl.BlockSpec((D, E), lambda b, qi, kv: (0, 0)),             # wo
                pl.BlockSpec((1, E), lambda b, qi, kv: (0, 0)),             # bo
            ],
            out_specs=pl.BlockSpec((None, TQ, E), lambda b, qi, kv: (b, qi, 0)),
            scratch_shapes=[
                pltpu.VMEM((TQ, H), jnp.float32),   # running per-head max
                pltpu.VMEM((TQ, H), jnp.float32),   # running per-head denom
                pltpu.VMEM((TQ, D), jnp.float32),   # un-normalized output acc
            ],
        ),
        compiler_params=pltpu.CompilerParams(
            dimension_semantics=("parallel", "parallel", "arbitrary"),
            vmem_limit_bytes=vmem_limit,
        ),
        cost_estimate=cost,
    )(qp, kp, vp, wo_c, bo_c)

    if nq_pad != Nq:
        out = out[:, :Nq, :]
    return out


# --------------------------------------------------------------------------
# Parameter init and pure-JAX reference
# --------------------------------------------------------------------------
def init_params(key, embedding_dim, internal_dim):
    """Deterministic init of the four Linear layers (weights as (in, out))."""
    ks = jax.random.split(key, 8)

    def lin(kw, kb, fan_in, fan_out):
        lim = 1.0 / math.sqrt(fan_in)
        w = jax.random.uniform(kw, (fan_in, fan_out), jnp.float32, -lim, lim)
        b = jax.random.uniform(kb, (fan_out,), jnp.float32, -lim, lim)
        return w, b

    wq, bq = lin(ks[0], ks[1], embedding_dim, internal_dim)
    wk, bk = lin(ks[2], ks[3], embedding_dim, internal_dim)
    wv, bv = lin(ks[4], ks[5], embedding_dim, internal_dim)
    wo, bo = lin(ks[6], ks[7], internal_dim, embedding_dim)
    return (wq, bq, wk, bk, wv, bv, wo, bo)


def attention_reference(q, k, v, params, *, num_heads):
    """Pure-JAX reference mirroring the PyTorch forward, for verification."""
    wq, bq, wk, bk, wv, bv, wo, bo = params
    B, Nq, _ = q.shape
    qp = q @ wq + bq
    kp = k @ wk + bk
    vp = v @ wv + bv
    D = qp.shape[-1]
    dh = D // num_heads

    def sep(x):
        b, n, c = x.shape
        return x.reshape(b, n, num_heads, c // num_heads).transpose(0, 2, 1, 3)

    qh, kh, vh = sep(qp), sep(kp), sep(vp)
    attn = (qh @ jnp.swapaxes(kh, -1, -2)) / math.sqrt(dh)
    attn = jax.nn.softmax(attn, axis=-1)
    out = attn @ vh
    out = out.transpose(0, 2, 1, 3).reshape(B, Nq, D)
    return out @ wo + bo


if __name__ == "__main__":
    # small shapes consistent with the module
    B, Nq, Nk = 2, 8, 16
    embedding_dim, num_heads, downsample_rate = 32, 4, 1
    internal_dim = embedding_dim // downsample_rate

    key = jax.random.PRNGKey(0)
    kq, kk, kv, kp = jax.random.split(key, 4)
    q = jax.random.normal(kq, (B, Nq, embedding_dim), jnp.float32)
    k = jax.random.normal(kk, (B, Nk, embedding_dim), jnp.float32)
    v = jax.random.normal(kv, (B, Nk, embedding_dim), jnp.float32)
    params = init_params(kp, embedding_dim, internal_dim)

    out = attention_forward(q, k, v, params, num_heads=num_heads)
    out = jax.block_until_ready(out)
    ref = attention_reference(q, k, v, params, num_heads=num_heads)
    assert out.shape == (B, Nq, embedding_dim)
    # Tolerance loosened slightly vs exact math because the softmax denominator
    # uses the hardware approximate reciprocal (EUP), ~1e-4 relative accuracy.
    assert jnp.allclose(out, ref, atol=1e-2, rtol=1e-2), (
        float(jnp.max(jnp.abs(out - ref))))

    # Second check: exercise the flash path (query padding, multiple key tiles
    # with masked padded columns, online-softmax accumulation across kv steps).
    B2, Nq2, Nk2 = 1, 12, 40
    k2q, k2k, k2v = jax.random.split(jax.random.PRNGKey(1), 3)
    q2 = jax.random.normal(k2q, (B2, Nq2, embedding_dim), jnp.float32)
    k2 = jax.random.normal(k2k, (B2, Nk2, embedding_dim), jnp.float32)
    v2 = jax.random.normal(k2v, (B2, Nk2, embedding_dim), jnp.float32)
    out2 = attention_forward(q2, k2, v2, params, num_heads=num_heads,
                             tile_q=8, tile_k=16)
    out2 = jax.block_until_ready(out2)
    ref2 = attention_reference(q2, k2, v2, params, num_heads=num_heads)
    assert out2.shape == (B2, Nq2, embedding_dim)
    assert jnp.allclose(out2, ref2, atol=1e-2, rtol=1e-2), (
        float(jnp.max(jnp.abs(out2 - ref2))))

    # Note: self.dropout is defined in __init__ but never applied in forward,
    # so it is (correctly) omitted here.
    print("KERNEL_OK")
</pallas_src>

<mosaic_0001>
module attributes {stable_mosaic.version = 11 : i64} {
  func.func @_linear_kernel(%arg0: i32, %arg1: i32, %arg2: memref<1x8x32xf32, #tpu.memory_space<vmem>>, %arg3: memref<32x32xf32, #tpu.memory_space<vmem>>, %arg4: memref<1x32xf32, #tpu.memory_space<vmem>>, %arg5: memref<1x8x32xf32, #tpu.memory_space<vmem>>) attributes {dimension_semantics = [#tpu.dimension_semantics<parallel>, #tpu.dimension_semantics<parallel>], iteration_bounds = array<i64: 2, 1>, scalar_prefetch = 0 : i64, scratch_operands = 0 : i64, tpu.core_type = #tpu.core_type<tc>, window_params = [{transform_indices = @transform_0, window_bounds = array<i64: 1, 8, 32>}, {pipeline_mode = #tpu.pipeline_mode<synchronous>, transform_indices = @transform_1, window_bounds = array<i64: 32, 32>}, {pipeline_mode = #tpu.pipeline_mode<synchronous>, transform_indices = @transform_2, window_bounds = array<i64: 1, 32>}, {transform_indices = @transform_3, window_bounds = array<i64: 1, 8, 32>}]} {
    %c0 = arith.constant 0 : index
    %c0_0 = arith.constant 0 : index
    %c0_1 = arith.constant 0 : index
    %0 = vector.load %arg2[%c0, %c0_0, %c0_1] : memref<1x8x32xf32, #tpu.memory_space<vmem>>, vector<1x8x32xf32>
    %1 = vector.shape_cast %0 : vector<1x8x32xf32> to vector<8x32xf32>
    %c0_2 = arith.constant 0 : index
    %c0_3 = arith.constant 0 : index
    %2 = vector.load %arg3[%c0_2, %c0_3] : memref<32x32xf32, #tpu.memory_space<vmem>>, vector<32x32xf32>
    %cst = arith.constant dense<0.000000e+00> : vector<8x32xf32>
    %3 = tpu.matmul %1, %2, %cst {dimension_numbers = #tpu.dot_dimension_numbers<[1], [0], [0], [1], [0, 0, 1, 1], [], []>} : vector<8x32xf32>, vector<32x32xf32>, vector<8x32xf32> -> vector<8x32xf32>
    %c0_4 = arith.constant 0 : index
    %c0_5 = arith.constant 0 : index
    %4 = vector.load %arg4[%c0_4, %c0_5] : memref<1x32xf32, #tpu.memory_space<vmem>>, vector<1x32xf32>
    %5 = vector.broadcast %4 : vector<1x32xf32> to vector<8x32xf32>
    %6 = arith.addf %3, %5 : vector<8x32xf32>
    %c0_6 = arith.constant 0 : index
    %c0_7 = arith.constant 0 : index
    %c0_8 = arith.constant 0 : index
    %7 = vector.load %arg5[%c0_6, %c0_7, %c0_8] : memref<1x8x32xf32, #tpu.memory_space<vmem>>, vector<1x8x32xf32>
    %8 = vector.shape_cast %7 : vector<1x8x32xf32> to vector<8x32xf32>
    %9 = vector.shape_cast %6 : vector<8x32xf32> to vector<1x8x32xf32>
    tpu.vector_store %arg5[%c0_6, %c0_7, %c0_8], %9 {strides = array<i32>} : memref<1x8x32xf32, #tpu.memory_space<vmem>>, vector<1x8x32xf32>,
    return
  }
  func.func @transform_0(%arg0: i32, %arg1: i32) -> (i32, i32, i32) {
    %c0_i32 = arith.constant 0 : i32
    %c0_i32_0 = arith.constant 0 : i32
    return %arg0, %arg1, %c0_i32 : i32, i32, i32
  }
  func.func @transform_1(%arg0: i32, %arg1: i32) -> (i32, i32) {
    %c0_i32 = arith.constant 0 : i32
    %c0_i32_0 = arith.constant 0 : i32
    %c0_i32_1 = arith.constant 0 : i32
    return %c0_i32, %c0_i32_0 : i32, i32
  }
  func.func @transform_2(%arg0: i32, %arg1: i32) -> (i32, i32) {
    %c0_i32 = arith.constant 0 : i32
    %c0_i32_0 = arith.constant 0 : i32
    %c0_i32_1 = arith.constant 0 : i32
    return %c0_i32, %c0_i32_0 : i32, i32
  }
  func.func @transform_3(%arg0: i32, %arg1: i32) -> (i32, i32, i32) {
    %c0_i32 = arith.constant 0 : i32
    %c0_i32_0 = arith.constant 0 : i32
    return %arg0, %arg1, %c0_i32 : i32, i32, i32
  }
}

</mosaic_0001>

<bundles_post_ra>
// kernel: tpu_custom_call.1
= control target key start
LH: loop header
LB: loop body
LE: loop exit
PB: predicated region body
PF: predicated region fallthrough
CT: control target
= control target key end

     0   :  { %8 = vsyncpa [#allocation3], 0  ;;  %s918_s0 = inlined_call_operand.hbm [shape: f32[2,8,32], index: 0, kind: input, shape index: {}]   ;;  %s919_s1 = inlined_call_operand.hbm [shape: f32[32,32], index: 1, kind: input, shape index: {}]   ;;  %s920_s2 = inlined_call_operand.vmem [shape: f32[1,32], index: 2, kind: input, shape index: {}]   ;;  %s921_s3 = inlined_call_operand.hbm [shape: f32[2,8,32], index: 3, kind: output, shape index: {}]  }
   0x1   :  { %10 = vsyncpa [#allocation3 + $0x1], 0 }
   0x2   :  { %11 = vsyncpa [#allocation6], 0 }
   0x3   :  { %12 = vsyncpa [#allocation4], 0 }
   0x4   :  { %14 = vsyncpa [#allocation4 + $0x1], 0  ;;  %s701_s12 = smov 0   ;;  %s703_s13 = smov 0  }
   0x5   :  { %s705_s14 = smov 0   ;;  %s707_s15 = smov 0  }
   0x6   :  { %s709_s16 = smov 0   ;;  %s711_s17 = smov 0  }
   0x7 LB: > { %s410_s18 = sadd.s32 4294967295, %s671_s17   ;;  %s411_s19 = sadd.s32 4294967294, %s671_s17   ;;  %s671_s17 = sphi %s711_s17, %s20_s17   ;;  %s667_s16 = sphi %s709_s16, %s945_s16   ;;  %s663_s15 = sphi %s707_s15, %s944_s15   ;;  %s659_s14 = sphi %s705_s14, %s943_s14   ;;  %s655_s13 = sphi %s703_s13, %s942_s13   ;;  %s651_s12 = sphi %s701_s12, %s941_s12  }
   0x8   : > { %p54_p0 = scmp.ne.s32.totalorder %s655_s13, %s651_s12  ;;  %p735_p1 = scmp.eq.s32.totalorder %s410_s18, 0 }
   0x9   : > { %p739_p2 = scmp.eq.s32.totalorder %s410_s18, 1  ;;  %p128_p3 = scmp.eq.s32.totalorder %s411_s19, 1 }
   0xa   : > { %s926_s20 = scalar_select %p735_p1, 1, 0 }
   0xb   : > { %s927_s21 = scalar_select %p739_p2, 1, 0 }
   0xc   : > { %p745_p4 = por %p735_p1, %p54_p0  ;;  %p412_p5 = scmp.ge.s32.totalorder %s671_s17, 1 }
   0xd   : > { %p750_p6 = por %p128_p3, %p54_p0  ;;  %p135_p7 = scmp.lt.s32.totalorder %s671_s17, 3 }
   0xe   : > { %s928_s22 = scalar_select %p745_p4, 1, 0 }
   0xf   : > { %s929_s23 = scalar_select %p750_p6, 1, 0 }
  0x10   : > { %p755_p8 = pnand %p412_p5, %p135_p7  ;;  %s673_s25 = smov [#allocation5]  }
  0x11   : > { %s147_s26 = sshll.u32 %s673_s25, 4  ;;  %s32_s28 = sadd.s32 1, %s667_s16  ;;  %s148_s26 = int_to_ptr.vmem [resolvable:$true] %s147_s26 }
  0x12   : > { %s930_s24 = scalar_select %p755_p8, 1, 0 }
  0x13   : > { %p457_p9 = pneg %p755_p8  ;;  %s527_s4 = scalar_lea.hbm %s919_s1, 512 }
  0x14   : > { %p528_p12 = scmp.ne.s32.totalorder %s919_s1, %s527_s4  ;;  %p534_p5 = scmp.lt.u32.totalorder %s527_s4, %s919_s1 }
  0x15   : > { %p764_p11 = pnand %p457_p9, %p735_p1 }
  0x17   : > { %p529_p13 = pneg %p764_p11 }
  0x19   : > { %p530_p0 = pnand %p529_p13, %p528_p12 }
  0x1b   : > { %p531_p3 = pneg %p530_p0 }
  0x1d   : > { %p536_p7 = pnand %p534_p5, %p531_p3 }
  0x1f   : > { %539 = shalt.err (!%p536_p7)
}
  0x20   : > { %s540_s9 = scalar_lea.vmem %s148_s26, 512  ;;  %p548_p1 = scmp.lt.s32.totalorder %s148_s26, %s148_s26 }
  0x21   : > { %p541_p9 = scmp.ne.s32.totalorder %s148_s26, %s540_s9  ;;  %p549_p4 = scmp.lt.s32.totalorder %s540_s9, %s540_s9 }
  0x23   : > { %p543_p10 = pnand %p541_p9, %p529_p13  ;;  %p550_p8 = por %p549_p4, %p548_p1 }
  0x25   : > { %p544_p6 = pneg %p543_p10 }
  0x27   : > { %p551_p2 = pnand %p550_p8, %p544_p6 }
  0x29   : > { %554 = shalt.err (!%p551_p2)
}
  0x2a   : > { %s674_s10 = smov 128   ;;  %s675_s11 = smov 8  }
  0x2b   : > { %460 = dma.hbm_to_vmem [thread:$0]  (!%p764_p11), %s919_s1, 512, %s148_s26, [#allocation6], %s674_s10, %s674_s10, %s675_s11  }
  0x2c   : > { %p34_p1 = scmp.ge.s32.totalorder %s32_s28, 2  ;;  %s41_s25 = sadd.s32 1, %s659_s14 }
  0x2d   : > { %p48_p2 = scmp.ne.s32.totalorder %s659_s14, %s655_s13  ;;  %p49_p4 = scmp.eq.s32.totalorder %s671_s17, 0 }
  0x2e   : > { %s947_s28 = smov (%p34_p1, %s32_s28), 0  ;;  %p933_p8 = scmp.ne.s32.totalorder %s927_s21, 0 }
  0x2f   : > { %p791_p6 = por %p49_p4, %p48_p2  ;;  %s36_s27 = ssub.s32 %s667_s16, %s947_s28 }
  0x30   : > { %p797_p10 = por %p933_p8, %p48_p2  ;;  %p470_p12 = scmp.lt.s32.totalorder %s671_s17, 2 }
  0x31   : > { %p39_p11 = scmp.eq.s32.totalorder %s36_s27, 0  ;;  %s164_s26 = sand.u32 1, %s659_s14  }
  0x32   : > { %s415_s4 = sshll.u32 %s164_s26, 3  ;;  %s416_s6 = sshll.u32 %s667_s16, 7 }
  0x33   : > { %s806_s5 = scalar_select %p39_p11, %s659_s14, %s41_s25  }
  0x34   : > { %s812_s9 = scalar_lea.hbm %s918_s0, %s416_s6  ;;  %s168_s21 = scalar_lea.vmem [#allocation2], %s415_s4 }
  0x35   : > { %s176_s10 = sshll.u32 %s168_s21, 4  ;;  %p818_p13 = pnand %p470_p12, %p791_p6  ;;  %s814_s10 = int_to_ptr.vmem [resolvable:$true] %s176_s10 }
  0x36   : > { %s165_s18 = scalar_lea.sflag [#allocation3], %s164_s26  ;;  %s555_s19 = scalar_lea.hbm %s812_s9, 128 }
  0x37   : > { %p556_p0 = scmp.ne.s32.totalorder %s812_s9, %s555_s19  ;;  %p557_p3 = pneg %p818_p13 }
  0x38   : > { %s560_s4 = scalar_lea.hbm %s918_s0, 256  ;;  %p561_p9 = scmp.lt.u32.totalorder %s812_s9, %s918_s0 }
  0x39   : > { %p558_p5 = pnand %p557_p3, %p556_p0  ;;  %p562_p1 = scmp.lt.u32.totalorder %s560_s4, %s555_s19 }
  0x3a   : > { %p564_p4 = scmp.lt.u32.totalorder %s555_s19, %s812_s9 }
  0x3b   : > { %p559_p7 = pneg %p558_p5  ;;  %p563_p2 = por %p562_p1, %p561_p9 }
  0x3d   : > { %p565_p6 = por %p564_p4, %p563_p2 }
  0x3f   : > { %p566_p8 = pnand %p565_p6, %p559_p7 }
  0x41   : > { %569 = shalt.err (!%p566_p8)
}
  0x42   : > { %s570_s26 = scalar_lea.vmem %s814_s10, 128  ;;  %s676_s7 = smov [#allocation2]  }
  0x43   : > { %p571_p12 = scmp.ne.s32.totalorder %s814_s10, %s570_s26  ;;  %s575_s8 = sshll.u32 %s676_s7, 4  ;;  %s576_s8 = int_to_ptr.vmem [resolvable:$false] %s575_s8 }
  0x44   : > { %s577_s21 = scalar_lea.vmem %s576_s8, 256  ;;  %p578_p5 = scmp.lt.s32.totalorder %s814_s10, %s576_s8 }
  0x45   : > { %p573_p11 = pnand %p571_p12, %p557_p3  ;;  %p579_p9 = scmp.lt.s32.totalorder %s577_s21, %s570_s26 }
  0x47   : > { %p574_p0 = pneg %p573_p11  ;;  %p580_p1 = por %p579_p9, %p578_p5 }
  0x49   : > { %p581_p2 = pnand %p580_p1, %p574_p0 }
  0x4b   : > { %584 = shalt.err (!%p581_p2)
}
  0x4c   : > { %464 = dma.hbm_to_vmem [thread:$0]  (!%p818_p13), %s812_s9, 128, %s814_s10, %s165_s18  }
  0x4d   : > { %p936_p7 = scmp.ne.s32.totalorder %s930_s24, 0 }
  0x4e   : > { %s850_s19 = sand.u32 (!%p936_p7), 1, %s655_s13   ;;  %p937_p3 = scmp.ne.s32.totalorder (!%p936_p7), %s928_s22, 0 }
  0x4f   : > { %185 = sbr.rel (%p936_p7) target bundleno = 329 (0x149), region = 32  ;;  %s418_s25 = sshll.u32 (!%p936_p7), %s850_s19, 3 }
  0x50   : > { %s188_s27 = scalar_lea.sflag (!%p936_p7), [#allocation3], %s850_s19  ;;  %s191_s4 = scalar_lea.vmem (!%p936_p7), [#allocation2], %s418_s25 }
  0x56   : > { %638 = dma.done.wait (%p937_p3), %s188_s27, 128  }
  0x57   : > { %640 = vsyncadd (%p937_p3), %s188_s27, 4294967168  ;;  %p938_p4 = scmp.ne.s32.totalorder %s926_s20, 0 }
  0x59   : > { %642 = dma.done.wait (%p938_p4), [#allocation6], 512  }
  0x5a   : > { %644 = vsyncadd (%p938_p4), [#allocation6], 4294966784  ;;  %v677_v0 = vmov 0.0|0.0   ;;  %vm678_vm0 = vmmov 0   ;;  %v679_v1 = vmov 0.0   ;;  %v219_v2 = vld [vmem:[#allocation5] sm:$0xff] }
  0x5b   : > { %443 = vmatprep.subr.bf16.mxu0 %v677_v0  ;;  %440 = vmatprep.mubr.msk.f32.mxu0 %vm678_vm0, %v679_v1  ;;  %v220_v3 = vld [vmem:[#allocation5 + $0x8] sm:$0xff]  ;;  %v221_v4 = vld [vmem:[#allocation5 + $0x10] sm:$0xff]  ;;  %v222_v6 = vld [vmem:[#allocation5 + $0x18] sm:$0xff]  ;;  %vm230_vm1 = vcmask 261120   ;;  %s424_s24 = sshll.u32 %s663_s15, 7  ;;  %s217_s9 = scalar_lea.vmem [#allocation7], %s418_s25 }
  0x5c   : > { %v444_v5 = vpack.c.bf16 %v220_v3, %v219_v2  ;;  %v447_v7 = vpack.c.bf16 %v222_v6, %v221_v4  ;;  %v218_v8 = vld [vmem:[%s191_s4] sm:$0xff]  ;;  %s320_s10 = sshll.u32 %s217_s9, 4  ;;  %s869_s29 = scalar_lea.hbm %s921_s3, %s424_s24  ;;  %s871_s10 = int_to_ptr.vmem [resolvable:$true] %s320_s10 }
  0x5d   : > { %v421_v9 = vld [vmem:[%s920_s2] ss:$0 sm:$0xff]  ;;  %s306_s6 = scalar_lea.sflag [#allocation4], %s850_s19  ;;  %s585_s26 = scalar_lea.vmem %s871_s10, 128 }
  0x5e   : > { %445 = vmatpush3.bf16.msra.mxu0 %v444_v5  ;;  %p586_p13 = scmp.ne.s32.totalorder %s871_s10, %s585_s26  ;;  %s680_s15 = smov [#allocation7]  }
  0x5f   : > { %446 = vmatprep.subr.bf16.mxu0 %v677_v0  ;;  %s589_s7 = sshll.u32 %s680_s15, 4  ;;  %s590_s7 = int_to_ptr.vmem [resolvable:$false] %s589_s7 }
  0x60   : > { %p587_p6 = pnand %p586_p13, %p797_p10  ;;  %s591_s8 = scalar_lea.vmem %s590_s7, 256 }
  0x61   : > { %p592_p12 = scmp.lt.s32.totalorder %s871_s10, %s590_s7  ;;  %p593_p11 = scmp.lt.s32.totalorder %s591_s8, %s585_s26 }
  0x62   : > { %448 = vmatpush3.bf16.msra.mxu0 %v447_v7  ;;  %p588_p8 = pneg %p587_p6 }
  0x63   : > { %p594_p0 = por %p593_p11, %p592_p12 }
  0x65   : > { %441 = vmatmul.mubr.msk.f32.vlgmr.msra.gmra.mrb[0].mxu0 %vm230_vm1, %v218_v8  ;;  %p595_p5 = pnand %p594_p0, %p588_p8 }
 0x138   : > { %v300_v10 = vpop.f32.mrb[0].mxu0 }
 0x139   : > { %v301_v11 = vadd.f32 %v421_v9, %v300_v10  ;;  %v442_v12 = vpop.f32.mrb[1].mxu0 }
 0x13b   : > { %304 = vst.msk [vmem:[%s217_s9] sm:$0xff] %vm230_vm1, %v301_v11 }
 0x13c   : > { %598 = shalt.err (!%p595_p5)
}
 0x13d   : > { %s599_s21 = scalar_lea.hbm %s869_s29, 128  ;;  %s603_s27 = scalar_lea.hbm %s921_s3, 256 }
 0x13e   : > { %p600_p9 = scmp.ne.s32.totalorder %s869_s29, %s599_s21  ;;  %p604_p7 = scmp.lt.u32.totalorder %s869_s29, %s921_s3 }
 0x13f   : > { %p605_p3 = scmp.lt.u32.totalorder %s603_s27, %s599_s21  ;;  %p607_p13 = scmp.lt.u32.totalorder %s599_s21, %s869_s29 }
 0x140   : > { %p601_p1 = pnand %p600_p9, %p797_p10 }
 0x141   : > { %p606_p4 = por %p605_p3, %p604_p7 }
 0x142   : > { %p602_p2 = pneg %p601_p1 }
 0x143   : > { %p608_p6 = por %p607_p13, %p606_p4 }
 0x145   : > { %p609_p8 = pnand %p608_p6, %p602_p2 }
 0x147   : > { %612 = shalt.err (!%p609_p8)
}
 0x148   : > { %455 = dma.vmem_to_hbm [thread:$0]  (%p797_p10), %s871_s10, 128, %s869_s29, %s306_s6  }
 0x149 PF: > { %s332_s22 = sand.u32 1, %s651_s12   ;;  %p939_p12 = scmp.ne.s32.totalorder %s929_s23, 0 }
 0x14a   : > { %p940_p11 = scmp.ge.s32.totalorder %s671_s17, 2  ;;  %s333_s24 = scalar_lea.sflag [#allocation4], %s332_s22 }
 0x14c   : > { %p466_p0 = pnand %p940_p11, %p939_p12 }
 0x14e   : > { %646 = dma.done.wait (!%p466_p0), %s333_s24, 128  }
 0x14f   : > { %648 = vsyncadd (!%p466_p0), %s333_s24, 4294967168  ;;  %s20_s17 = sadd.s32 1, %s671_s17   ;;  %s941_s12 = smov %s655_s13 }
 0x150   : > { %p17_p5 = scmp.ge.s32.totalorder %s20_s17, 4   ;;  %s942_s13 = smov %s659_s14 }
 0x151   : > { %s943_s14 = smov %s806_s5  ;;  %s944_s15 = smov %s667_s16 }
 0x152   : > { %s945_s16 = smov %s947_s28  ;;  %19 = sbr.rel (!%p17_p5) target bundleno = 7 (0x7), region = 81 }
 0x159   :  { %338 = vsyncpa [#allocation3], 1 }
 0x15a   :  { %340 = vsyncpa [#allocation3 + $0x1], 1 }
 0x15b   :  { %341 = vsyncpa [#allocation6], 1 }
 0x15c   :  { %342 = vsyncpa [#allocation4], 1 }
 0x15d   :  { %344 = vsyncpa [#allocation4 + $0x1], 1 }

</bundles_post_ra>
